<compile_context>
chip_gen: v5e
topology: v5e:2x2
jax: 0.10.0
libtpu: 0.0.40
codegen_flags: <defaults>
</compile_context>

<pallas_src>
import functools

import jax
import jax.numpy as jnp
from jax.experimental import pallas as pl
from jax.experimental.pallas import tpu as pltpu


def _round_up(x, m):
    return ((x + m - 1) // m) * m


def _cdiv(a, b):
    return -(-a // b)


def dqn_kernel(x_ref, w1_ref, b1_ref, w2_ref, b2_ref, w3_ref, b3_ref, out_ref):
    # fc1 + relu  (bf16 MXU inputs, f32 accumulation, f32 elementwise)
    x = x_ref[...].astype(jnp.bfloat16)
    h1 = jnp.dot(x, w1_ref[...], preferred_element_type=jnp.float32)
    h1 = jnp.maximum(h1 + b1_ref[...], 0.0)
    # fc2 + relu
    h2 = jnp.dot(h1.astype(jnp.bfloat16), w2_ref[...],
                 preferred_element_type=jnp.float32)
    h2 = jnp.maximum(h2 + b2_ref[...], 0.0)
    # fc3 (no activation); true action_size columns, f32 store
    h3 = jnp.dot(h2.astype(jnp.bfloat16), w3_ref[...],
                 preferred_element_type=jnp.float32)
    out_ref[...] = (h3 + b3_ref[...]).astype(out_ref.dtype)


@functools.partial(jax.jit, static_argnames=("block_b",))
def dqn_forward(x, w1, b1, w2, b2, w3, b3, block_b=4096):
    """x: [B, state_size] f32.  Weights are [in_features, out_features] (bf16),
    biases are [1, out_features] (f32), i.e. already `prepare_params`-processed.
    Computes x @ W + b per layer (== PyTorch x @ W.T + b with W [out, in])."""
    B, S = x.shape
    A = w3.shape[1]

    if B <= block_b:
        # Single grid step: block == full array -> no padding, no partial block,
        # no per-step pipeline overhead.  (Tiny per-call workloads are overhead
        # bound; splitting them helps nobody, including v7x.)
        TB = B
        grid = (1,)
    else:
        # Large B: evenly sized tiles, 16-aligned (bf16 LHS sublane packing),
        # chosen to minimise last-tile padding.  >=2 parallel steps lets v7x
        # use both TensorCores.
        num_tiles = _cdiv(B, block_b)
        TB = _round_up(_cdiv(B, num_tiles), 16)
        grid = (_cdiv(B, TB),)

    def resident(arr):
        # Whole array as one block, constant index -> DMA'd once, stays in VMEM.
        nd = arr.ndim
        return pl.BlockSpec(arr.shape, lambda i, _nd=nd: (0,) * _nd)

    out = pl.pallas_call(
        dqn_kernel,
        out_shape=jax.ShapeDtypeStruct((B, A), jnp.float32),
        grid=grid,
        in_specs=[
            pl.BlockSpec((TB, S), lambda i: (i, 0)),   # x: tiled over batch
            resident(w1), resident(b1),
            resident(w2), resident(b2),
            resident(w3), resident(b3),
        ],
        out_specs=pl.BlockSpec((TB, A), lambda i: (i, 0)),
        compiler_params=pltpu.CompilerParams(
            dimension_semantics=("parallel",)),
    )(x, w1, b1, w2, b2, w3, b3)
    return out


def prepare_params(params):
    """One-time (hoisted) weight prep: bf16 copies of the matmul weights for the
    MXU; biases stay f32 [1, out] for f32 bias-add inside the kernel."""
    return (
        params["w1"].astype(jnp.bfloat16), params["b1"],
        params["w2"].astype(jnp.bfloat16), params["b2"],
        params["w3"].astype(jnp.bfloat16), params["b3"],
    )


def init_params(key, state_size, action_size):
    """Deterministic init mimicking nn.Linear's U(-1/sqrt(fan_in), 1/sqrt(fan_in))."""
    dims = [(state_size, 64), (64, 32), (32, action_size)]
    params = {}
    for i, (fan_in, fan_out) in enumerate(dims, start=1):
        key, kw, kb = jax.random.split(key, 3)
        bound = 1.0 / jnp.sqrt(jnp.float32(fan_in))
        params[f"w{i}"] = jax.random.uniform(
            kw, (fan_in, fan_out), jnp.float32, minval=-bound, maxval=bound)
        # biases kept 2-D [1, fan_out] for TPU-friendly broadcasting inside the kernel
        params[f"b{i}"] = jax.random.uniform(
            kb, (1, fan_out), jnp.float32, minval=-bound, maxval=bound)
    return params


if __name__ == "__main__":
    state_size, action_size = 16, 4
    batch = 300  # non-multiple-of-8 batch: exercised as one full-array tile (no padding)

    key = jax.random.PRNGKey(0)
    key, kx = jax.random.split(key)
    x = jax.random.normal(kx, (batch, state_size), dtype=jnp.float32)
    params = init_params(key, state_size, action_size)
    kparams = prepare_params(params)   # hoisted out of the per-call hot path

    out = dqn_forward(x, *kparams)
    out = jax.block_until_ready(out)

    # Reference check in plain JAX f32 (same math as the PyTorch module).
    # Kernel feeds the MXU bf16 operands with f32 accumulation, so tolerance
    # covers bf16 rounding of the operands (fine for DQN inference; flag if
    # ever reused for gradient/target computation).
    h1 = jnp.maximum(x @ params["w1"] + params["b1"], 0.0)
    h2 = jnp.maximum(h1 @ params["w2"] + params["b2"], 0.0)
    ref = h2 @ params["w3"] + params["b3"]
    assert out.shape == (batch, action_size)
    assert jnp.allclose(out, ref, atol=2e-2, rtol=2e-2)

    print("KERNEL_OK")
</pallas_src>

<mosaic_0001>
module attributes {stable_mosaic.version = 11 : i64} {
  func.func @dqn_kernel(%arg0: i32, %arg1: memref<300x16xf32, #tpu.memory_space<vmem>>, %arg2: memref<16x64xbf16, #tpu.memory_space<vmem>>, %arg3: memref<1x64xf32, #tpu.memory_space<vmem>>, %arg4: memref<64x32xbf16, #tpu.memory_space<vmem>>, %arg5: memref<1x32xf32, #tpu.memory_space<vmem>>, %arg6: memref<32x4xbf16, #tpu.memory_space<vmem>>, %arg7: memref<1x4xf32, #tpu.memory_space<vmem>>, %arg8: memref<300x4xf32, #tpu.memory_space<vmem>>) attributes {dimension_semantics = [#tpu.dimension_semantics<parallel>], iteration_bounds = array<i64: 1>, scalar_prefetch = 0 : i64, scratch_operands = 0 : i64, tpu.core_type = #tpu.core_type<tc>, window_params = [{transform_indices = @transform_0, window_bounds = array<i64: 300, 16>}, {pipeline_mode = #tpu.pipeline_mode<synchronous>, transform_indices = @transform_1, window_bounds = array<i64: 16, 64>}, {pipeline_mode = #tpu.pipeline_mode<synchronous>, transform_indices = @transform_2, window_bounds = array<i64: 1, 64>}, {pipeline_mode = #tpu.pipeline_mode<synchronous>, transform_indices = @transform_3, window_bounds = array<i64: 64, 32>}, {pipeline_mode = #tpu.pipeline_mode<synchronous>, transform_indices = @transform_4, window_bounds = array<i64: 1, 32>}, {pipeline_mode = #tpu.pipeline_mode<synchronous>, transform_indices = @transform_5, window_bounds = array<i64: 32, 4>}, {pipeline_mode = #tpu.pipeline_mode<synchronous>, transform_indices = @transform_6, window_bounds = array<i64: 1, 4>}, {transform_indices = @transform_7, window_bounds = array<i64: 300, 4>}]} {
    %c0 = arith.constant 0 : index
    %c0_0 = arith.constant 0 : index
    %0 = vector.load %arg1[%c0, %c0_0] : memref<300x16xf32, #tpu.memory_space<vmem>>, vector<300x16xf32>
    %1 = arith.truncf %0 : vector<300x16xf32> to vector<300x16xbf16>
    %c0_1 = arith.constant 0 : index
    %c0_2 = arith.constant 0 : index
    %2 = vector.load %arg2[%c0_1, %c0_2] : memref<16x64xbf16, #tpu.memory_space<vmem>>, vector<16x64xbf16>
    %cst = arith.constant dense<0.000000e+00> : vector<300x64xf32>
    %3 = tpu.matmul %1, %2, %cst {dimension_numbers = #tpu.dot_dimension_numbers<[1], [0], [0], [1], [0, 0, 1, 1], [], []>} : vector<300x16xbf16>, vector<16x64xbf16>, vector<300x64xf32> -> vector<300x64xf32>
    %c0_3 = arith.constant 0 : index
    %c0_4 = arith.constant 0 : index
    %4 = vector.load %arg3[%c0_3, %c0_4] : memref<1x64xf32, #tpu.memory_space<vmem>>, vector<1x64xf32>
    %5 = vector.broadcast %4 : vector<1x64xf32> to vector<300x64xf32>
    %6 = arith.addf %3, %5 : vector<300x64xf32>
    %cst_5 = arith.constant 0.000000e+00 : f32
    %7 = vector.broadcast %cst_5 : f32 to vector<300x64xf32>
    %8 = arith.maximumf %6, %7 : vector<300x64xf32>
    %9 = arith.truncf %8 : vector<300x64xf32> to vector<300x64xbf16>
    %c0_6 = arith.constant 0 : index
    %c0_7 = arith.constant 0 : index
    %10 = vector.load %arg4[%c0_6, %c0_7] : memref<64x32xbf16, #tpu.memory_space<vmem>>, vector<64x32xbf16>
    %cst_8 = arith.constant dense<0.000000e+00> : vector<300x32xf32>
    %11 = tpu.matmul %9, %10, %cst_8 {dimension_numbers = #tpu.dot_dimension_numbers<[1], [0], [0], [1], [0, 0, 1, 1], [], []>} : vector<300x64xbf16>, vector<64x32xbf16>, vector<300x32xf32> -> vector<300x32xf32>
    %c0_9 = arith.constant 0 : index
    %c0_10 = arith.constant 0 : index
    %12 = vector.load %arg5[%c0_9, %c0_10] : memref<1x32xf32, #tpu.memory_space<vmem>>, vector<1x32xf32>
    %13 = vector.broadcast %12 : vector<1x32xf32> to vector<300x32xf32>
    %14 = arith.addf %11, %13 : vector<300x32xf32>
    %cst_11 = arith.constant 0.000000e+00 : f32
    %15 = vector.broadcast %cst_11 : f32 to vector<300x32xf32>
    %16 = arith.maximumf %14, %15 : vector<300x32xf32>
    %17 = arith.truncf %16 : vector<300x32xf32> to vector<300x32xbf16>
    %c0_12 = arith.constant 0 : index
    %c0_13 = arith.constant 0 : index
    %18 = vector.load %arg6[%c0_12, %c0_13] : memref<32x4xbf16, #tpu.memory_space<vmem>>, vector<32x4xbf16>
    %cst_14 = arith.constant dense<0.000000e+00> : vector<300x4xf32>
    %19 = tpu.matmul %17, %18, %cst_14 {dimension_numbers = #tpu.dot_dimension_numbers<[1], [0], [0], [1], [0, 0, 1, 1], [], []>} : vector<300x32xbf16>, vector<32x4xbf16>, vector<300x4xf32> -> vector<300x4xf32>
    %c0_15 = arith.constant 0 : index
    %c0_16 = arith.constant 0 : index
    %20 = vector.load %arg7[%c0_15, %c0_16] : memref<1x4xf32, #tpu.memory_space<vmem>>, vector<1x4xf32>
    %21 = vector.broadcast %20 : vector<1x4xf32> to vector<300x4xf32>
    %22 = arith.addf %19, %21 : vector<300x4xf32>
    %c0_17 = arith.constant 0 : index
    %c0_18 = arith.constant 0 : index
    %23 = vector.load %arg8[%c0_17, %c0_18] : memref<300x4xf32, #tpu.memory_space<vmem>>, vector<300x4xf32>
    tpu.vector_store %arg8[%c0_17, %c0_18], %22 {strides = array<i32>} : memref<300x4xf32, #tpu.memory_space<vmem>>, vector<300x4xf32>,
    return
  }
  func.func @transform_0(%arg0: i32) -> (i32, i32) {
    %c0_i32 = arith.constant 0 : i32
    %c0_i32_0 = arith.constant 0 : i32
    return %arg0, %c0_i32 : i32, i32
  }
  func.func @transform_1(%arg0: i32) -> (i32, i32) {
    %c0_i32 = arith.constant 0 : i32
    %c0_i32_0 = arith.constant 0 : i32
    %c0_i32_1 = arith.constant 0 : i32
    return %c0_i32, %c0_i32_0 : i32, i32
  }
  func.func @transform_2(%arg0: i32) -> (i32, i32) {
    %c0_i32 = arith.constant 0 : i32
    %c0_i32_0 = arith.constant 0 : i32
    %c0_i32_1 = arith.constant 0 : i32
    return %c0_i32, %c0_i32_0 : i32, i32
  }
  func.func @transform_3(%arg0: i32) -> (i32, i32) {
    %c0_i32 = arith.constant 0 : i32
    %c0_i32_0 = arith.constant 0 : i32
    %c0_i32_1 = arith.constant 0 : i32
    return %c0_i32, %c0_i32_0 : i32, i32
  }
  func.func @transform_4(%arg0: i32) -> (i32, i32) {
    %c0_i32 = arith.constant 0 : i32
    %c0_i32_0 = arith.constant 0 : i32
    %c0_i32_1 = arith.constant 0 : i32
    return %c0_i32, %c0_i32_0 : i32, i32
  }
  func.func @transform_5(%arg0: i32) -> (i32, i32) {
    %c0_i32 = arith.constant 0 : i32
    %c0_i32_0 = arith.constant 0 : i32
    %c0_i32_1 = arith.constant 0 : i32
    return %c0_i32, %c0_i32_0 : i32, i32
  }
  func.func @transform_6(%arg0: i32) -> (i32, i32) {
    %c0_i32 = arith.constant 0 : i32
    %c0_i32_0 = arith.constant 0 : i32
    %c0_i32_1 = arith.constant 0 : i32
    return %c0_i32, %c0_i32_0 : i32, i32
  }
  func.func @transform_7(%arg0: i32) -> (i32, i32) {
    %c0_i32 = arith.constant 0 : i32
    %c0_i32_0 = arith.constant 0 : i32
    return %arg0, %c0_i32 : i32, i32
  }
}

</mosaic_0001>

<bundles_post_ra>
// kernel: dqn_forward.1
= control target key start
LH: loop header
LB: loop body
LE: loop exit
PB: predicated region body
PF: predicated region fallthrough
CT: control target
= control target key end

     0   :  { %vm96_vm0 = vcmask 130048   ;;  %vm351_vm1 = vcmask 523264   ;;  %vm590_vm2 = vcmask 261120   ;;  %vm752_vm3 = vcmask 31744   ;;  %s1410_s1 = inlined_call_operand.vmem [shape: bf16[16,64], index: 1, kind: input, shape index: {}]   ;;  %s1411_s0 = inlined_call_operand.vmem [shape: f32[300,16], index: 0, kind: input, shape index: {}]   ;;  %s1412_s2 = inlined_call_operand.vmem [shape: f32[1,64], index: 2, kind: input, shape index: {}]   ;;  %s1413_s3 = inlined_call_operand.vmem [shape: bf16[64,32], index: 3, kind: input, shape index: {}]   ;;  %s1414_s4 = inlined_call_operand.vmem [shape: f32[1,32], index: 4, kind: input, shape index: {}]   ;;  %s1415_s5 = inlined_call_operand.vmem [shape: bf16[32,4], index: 5, kind: input, shape index: {}]   ;;  %s1416_s6 = inlined_call_operand.vmem [shape: f32[1,4], index: 6, kind: input, shape index: {}]   ;;  %s1417_s7 = inlined_call_operand.vmem [shape: f32[300,4], index: 7, kind: output, shape index: {}]  }
   0x1   :  { %v881_v0 = vld [vmem:[%s1410_s1] sm:$0xff]  ;;  %v28_v2 = vld [vmem:[%s1411_s0 + $0x8] sm:$0xff]  ;;  %v29_v4 = vld [vmem:[%s1411_s0 + $0x10] sm:$0xff]  ;;  %vm790_vm4 = vcmask 27648  }
   0x2   :  { %v27_v1 = vld [vmem:[%s1411_s0] sm:$0xff]  ;;  %161 = vmatpush.bf16.msra.mxu0 %v881_v0  ;;  %888 = vmatpush.bf16.msra.mxu3 %v881_v0  ;;  %v30_v5 = vld [vmem:[%s1411_s0 + $0x18] sm:$0xff]  ;;  %v32_v8 = vld [vmem:[%s1411_s0 + $0x28] sm:$0xff] }
   0x3   :  { %v65_v3 = vpack.c.bf16 %v28_v2, %v27_v1  ;;  %v66_v6 = vpack.c.bf16 %v30_v5, %v29_v4  ;;  %v31_v7 = vld [vmem:[%s1411_s0 + $0x20] sm:$0xff]  ;;  %v33_v10 = vld [vmem:[%s1411_s0 + $0x30] sm:$0xff]  ;;  %v34_v11 = vld [vmem:[%s1411_s0 + $0x38] sm:$0xff] }
   0x4   :  { %v67_v9 = vpack.c.bf16 %v32_v8, %v31_v7  ;;  %v68_v12 = vpack.c.bf16 %v34_v11, %v33_v10  ;;  %v35_v13 = vld [vmem:[%s1411_s0 + $0x40] sm:$0xff]  ;;  %v36_v14 = vld [vmem:[%s1411_s0 + $0x48] sm:$0xff]  ;;  %v37_v16 = vld [vmem:[%s1411_s0 + $0x50] sm:$0xff] }
   0x5   :  { %800 = vmatmul.msk.bf16.vlgmr.msra.gmra.mxu0 %vm96_vm0, %v65_v3  ;;  %v69_v15 = vpack.c.bf16 %v36_v14, %v35_v13  ;;  %v38_v17 = vld [vmem:[%s1411_s0 + $0x58] sm:$0xff]  ;;  %v39_v19 = vld [vmem:[%s1411_s0 + $0x60] sm:$0xff]  ;;  %v40_v20 = vld [vmem:[%s1411_s0 + $0x68] sm:$0xff] }
   0x6   :  { %v70_v18 = vpack.c.bf16 %v38_v17, %v37_v16  ;;  %v885_v21 = vld [vmem:[%s1413_s3 + $0x18] sm:$0xff]  ;;  %v71_v22 = vpack.c.bf16 %v40_v20, %v39_v19  ;;  %v884_v23 = vld [vmem:[%s1413_s3 + $0x10] sm:$0xff]  ;;  %v883_v24 = vld [vmem:[%s1413_s3 + $0x8] sm:$0xff] }
   0x7   :  { %413 = vmatpush.bf16.msra.mxu1 %v885_v21  ;;  %889 = vmatpush.bf16.msrb.mxu3 %v885_v21  ;;  %v882_v25 = vld [vmem:[%s1413_s3] sm:$0xff]  ;;  %v41_v26 = vld [vmem:[%s1411_s0 + $0x70] sm:$0xff]  ;;  %v42_v27 = vld [vmem:[%s1411_s0 + $0x78] sm:$0xff] }
   0x8   :  { %v72_v28 = vpack.c.bf16 %v42_v27, %v41_v26  ;;  %v43_v29 = vld [vmem:[%s1411_s0 + $0x80] sm:$0xff]  ;;  %v44_v30 = vld [vmem:[%s1411_s0 + $0x88] sm:$0xff]  ;;  %v45_v39 = vld [vmem:[%s1411_s0 + $0x90] sm:$0xff] }
   0x9   :  { %v73_v31 = vpack.c.bf16 %v44_v30, %v43_v29  ;;  %v1018_v33 = vld [vmem:[%s1412_s2] ss:$0 sm:$0xff]  ;;  %v46_v40 = vld [vmem:[%s1411_s0 + $0x98] sm:$0xff]  ;;  %v48_v50 = vld [vmem:[%s1411_s0 + $0xa8] sm:$0xff] }
   0xa   :  { %v74_v42 = vpack.c.bf16 %v46_v40, %v45_v39  ;;  %v47_v49 = vld [vmem:[%s1411_s0 + $0xa0] sm:$0xff]  ;;  %v49_v59 = vld [vmem:[%s1411_s0 + $0xb0] sm:$0xff]  ;;  %v50_v60 = vld [vmem:[%s1411_s0 + $0xb8] sm:$0xff] }
   0xb   :  { %414 = vmatpush.bf16.msra.mxu1 %v884_v23  ;;  %890 = vmatpush.bf16.msrb.mxu3 %v884_v23  ;;  %v75_v52 = vpack.c.bf16 %v48_v50, %v47_v49  ;;  %v76_v62 = vpack.c.bf16 %v50_v60, %v49_v59  ;;  %v51_v5 = vld [vmem:[%s1411_s0 + $0xc0] sm:$0xff]  ;;  %v57_v10 = vld [vmem:[%s1411_s0 + $0xf0] sm:$0xff]  ;;  %v58_v11 = vld [vmem:[%s1411_s0 + $0xf8] sm:$0xff] }
   0xc   :  { %v54_v19 = vld [vmem:[%s1411_s0 + $0xd8] sm:$0xff]  ;;  %v59_v23 = vld [vmem:[%s1411_s0 + $0x100] sm:$0xff]  ;;  %v64_v49 = vld [vmem:[%s1411_s0 + $0x128] sm:$0xf] }
   0xf   :  { %415 = vmatpush.bf16.msra.mxu1 %v883_v24  ;;  %891 = vmatpush.bf16.msrb.mxu3 %v883_v24  ;;  %v60_v24 = vld [vmem:[%s1411_s0 + $0x108] sm:$0xff] }
  0x13   :  { %416 = vmatpush.bf16.msra.mxu1 %v882_v25  ;;  %892 = vmatpush.bf16.msrb.mxu3 %v882_v25  ;;  %v81_v25 = vpack.c.bf16 %v60_v24, %v59_v23 }
  0x15   :  { %801 = vmatmul.msk.bf16.gmra.mxu0 %vm96_vm0, %v66_v6  ;;  %v52_v6 = vld [vmem:[%s1411_s0 + $0xc8] sm:$0xff] }
  0x16   :  { %v77_v8 = vpack.c.bf16 %v52_v6, %v51_v5 }
  0x25   :  { %802 = vmatmul.msk.bf16.gmra.mxu0 %vm96_vm0, %v67_v9 }
  0x35   :  { %803 = vmatmul.msk.bf16.gmra.mxu0 %vm96_vm0, %v68_v12  ;;  %v80_v12 = vpack.c.bf16 %v58_v11, %v57_v10 }
  0x37   :  { %815 = vmatmul.msk.bf16.vlgmr.msra.gmra.mxu3 %vm96_vm0, %v80_v12 }
  0x45   :  { %804 = vmatmul.msk.bf16.gmra.mxu0 %vm96_vm0, %v69_v15 }
  0x47   :  { %816 = vmatmul.msk.bf16.gmra.mxu3 %vm96_vm0, %v81_v25 }
  0x55   :  { %805 = vmatmul.msk.bf16.gmra.mxu0 %vm96_vm0, %v70_v18  ;;  %v53_v18 = vld [vmem:[%s1411_s0 + $0xd0] sm:$0xff] }
  0x56   :  { %v78_v21 = vpack.c.bf16 %v54_v19, %v53_v18 }
  0x65   :  { %806 = vmatmul.msk.bf16.gmra.mxu0 %vm96_vm0, %v71_v22 }
  0x75   :  { %807 = vmatmul.msk.bf16.gmra.mxu0 %vm96_vm0, %v72_v28 }
  0x82   :  { %v163_v32 = vpop.f32.mrf.mxu0 }
  0x83   :  { %v164_v34 = vadd.f32 %v1018_v33, %v163_v32  ;;  %v56_v32 = vld [vmem:[%s1411_s0 + $0xe8] sm:$0xff] }
  0x85   :  { %808 = vmatmul.msk.bf16.gmra.mxu0 %vm96_vm0, %v73_v31  ;;  %v258_v37 = vmax.f32 %v164_v34, 0.0  ;;  %v55_v31 = vld [vmem:[%s1411_s0 + $0xe0] sm:$0xff] }
  0x8a   :  { %v165_v35 = vpop.f32.mrf.mxu0 }
  0x8b   :  { %v166_v36 = vadd.f32 %v1018_v33, %v165_v35  ;;  %v79_v35 = vpack.c.bf16 %v56_v32, %v55_v31 }
  0x8d   :  { %v259_v38 = vmax.f32 %v166_v36, 0.0 }
  0x8f   :  { %v296_v41 = vpack.c.bf16 %v259_v38, %v258_v37  ;;  %v61_v37 = vld [vmem:[%s1411_s0 + $0x110] sm:$0xff]  ;;  %v62_v38 = vld [vmem:[%s1411_s0 + $0x118] sm:$0xff] }
  0x90   :  { %v82_v39 = vpack.c.bf16 %v62_v38, %v61_v37 }
  0x91   :  { %835 = vmatmul.msk.bf16.vlgmr.msra.gmra.mxu1 %vm351_vm1, %v296_v41 }
  0x92   :  { %v168_v43 = vpop.f32.mrf.mxu0  ;;  %817 = vmatmul.msk.bf16.gmra.mxu3 %vm96_vm0, %v82_v39 }
  0x93   :  { %v169_v44 = vadd.f32 %v1018_v33, %v168_v43 }
  0x95   :  { %809 = vmatmul.msk.bf16.gmra.mxu0 %vm96_vm0, %v74_v42  ;;  %v260_v47 = vmax.f32 %v169_v44, 0.0 }
  0x9a   :  { %v170_v45 = vpop.f32.mrf.mxu0 }
  0x9b   :  { %v171_v46 = vadd.f32 %v1018_v33, %v170_v45 }
  0x9d   :  { %v261_v48 = vmax.f32 %v171_v46, 0.0 }
  0x9f   :  { %v297_v51 = vpack.c.bf16 %v261_v48, %v260_v47  ;;  %v887_v47 = vld [vmem:[%s1415_s5 + $0x8] sm:$0xff]  ;;  %v63_v48 = vld [vmem:[%s1411_s0 + $0x120] sm:$0xff] }
  0xa0   :  { %v83_v50 = vpack.c.bf16 %v64_v49, %v63_v48  ;;  %654 = vmatpush.bf16.msra.mxu2 %v887_v47  ;;  %893 = vmatpush.bf16.msra.mxu3 %v887_v47 }
  0xa1   :  { %836 = vmatmul.msk.bf16.gmra.mxu1 %vm351_vm1, %v297_v51  ;;  %v886_v51 = vld [vmem:[%s1415_s5] sm:$0xff] }
  0xa2   :  { %v173_v53 = vpop.f32.mrf.mxu0  ;;  %818 = vmatmul.msk.bf16.gmra.mxu3 %vm96_vm0, %v83_v50 }
  0xa3   :  { %v174_v54 = vadd.f32 %v1018_v33, %v173_v53 }
  0xa4   :  { %655 = vmatpush.bf16.msra.mxu2 %v886_v51  ;;  %894 = vmatpush.bf16.msra.mxu3 %v886_v51 }
  0xa5   :  { %810 = vmatmul.msk.bf16.gmra.mxu0 %vm96_vm0, %v75_v52  ;;  %v262_v57 = vmax.f32 %v174_v54, 0.0 }
  0xaa   :  { %v175_v55 = vpop.f32.mrf.mxu0 }
  0xab   :  { %v176_v56 = vadd.f32 %v1018_v33, %v175_v55 }
  0xad   :  { %v263_v58 = vmax.f32 %v176_v56, 0.0 }
  0xaf   :  { %v298_v61 = vpack.c.bf16 %v263_v58, %v262_v57 }
  0xb1   :  { %837 = vmatmul.msk.bf16.gmra.mxu1 %vm351_vm1, %v298_v61 }
  0xb2   :  { %v178_v63 = vpop.f32.mrf.mxu0 }
  0xb3   :  { %v179_v0 = vadd.f32 %v1018_v33, %v178_v63 }
  0xb5   :  { %811 = vmatmul.msk.bf16.gmra.mxu0 %vm96_vm0, %v76_v62  ;;  %v264_v3 = vmax.f32 %v179_v0, 0.0 }
  0xba   :  { %v180_v1 = vpop.f32.mrf.mxu0 }
  0xbb   :  { %v181_v2 = vadd.f32 %v1018_v33, %v180_v1 }
  0xbd   :  { %v265_v4 = vmax.f32 %v181_v2, 0.0  ;;  %v1126_v2 = vld [vmem:[%s1414_s4] ss:$0 sm:$0xff] }
  0xbf   :  { %v299_v7 = vpack.c.bf16 %v265_v4, %v264_v3 }
  0xc1   :  { %838 = vmatmul.msk.bf16.gmra.mxu1 %vm351_vm1, %v299_v7 }
  0xc2   :  { %v183_v9 = vpop.f32.mrf.mxu0 }
  0xc3   :  { %v184_v13 = vadd.f32 %v1018_v33, %v183_v9 }
  0xc5   :  { %812 = vmatmul.msk.bf16.gmra.mxu0 %vm96_vm0, %v77_v8  ;;  %v266_v16 = vmax.f32 %v184_v13, 0.0 }
  0xca   :  { %v185_v14 = vpop.f32.mrf.mxu0 }
  0xcb   :  { %v186_v15 = vadd.f32 %v1018_v33, %v185_v14 }
  0xcd   :  { %v267_v17 = vmax.f32 %v186_v15, 0.0 }
  0xcf   :  { %v300_v20 = vpack.c.bf16 %v267_v17, %v266_v16 }
  0xd1   :  { %839 = vmatmul.msk.bf16.gmra.mxu1 %vm351_vm1, %v300_v20 }
  0xd2   :  { %v188_v22 = vpop.f32.mrf.mxu0 }
  0xd3   :  { %v189_v26 = vadd.f32 %v1018_v33, %v188_v22 }
  0xd5   :  { %813 = vmatmul.msk.bf16.gmra.mxu0 %vm96_vm0, %v78_v21  ;;  %v268_v29 = vmax.f32 %v189_v26, 0.0 }
  0xda   :  { %v190_v27 = vpop.f32.mrf.mxu0 }
  0xdb   :  { %v191_v28 = vadd.f32 %v1018_v33, %v190_v27 }
  0xdd   :  { %v269_v30 = vmax.f32 %v191_v28, 0.0 }
  0xdf   :  { %v301_v34 = vpack.c.bf16 %v269_v30, %v268_v29 }
  0xe1   :  { %840 = vmatmul.msk.bf16.gmra.mxu1 %vm351_vm1, %v301_v34 }
  0xe2   :  { %v193_v36 = vpop.f32.mrf.mxu0 }
  0xe3   :  { %v194_v40 = vadd.f32 %v1018_v33, %v193_v36 }
  0xe5   :  { %814 = vmatmul.msk.bf16.gmra.mxu0 %vm96_vm0, %v79_v35  ;;  %v270_v43 = vmax.f32 %v194_v40, 0.0 }
  0xea   :  { %v195_v41 = vpop.f32.mrf.mxu0 }
  0xeb   :  { %v196_v42 = vadd.f32 %v1018_v33, %v195_v41 }
  0xed   :  { %v271_v44 = vmax.f32 %v196_v42, 0.0 }
  0xef   :  { %v302_v45 = vpack.c.bf16 %v271_v44, %v270_v43 }
  0xf1   :  { %841 = vmatmul.msk.bf16.gmra.mxu1 %vm351_vm1, %v302_v45 }
  0xf2   :  { %v198_v46 = vpop.f32.mrf.mxu0 }
  0xf3   :  { %v199_v52 = vadd.f32 %v1018_v33, %v198_v46 }
  0xf5   :  { %v272_v55 = vmax.f32 %v199_v52, 0.0 }
  0xfa   :  { %v200_v53 = vpop.f32.mrf.mxu0 }
  0xfb   :  { %v201_v54 = vadd.f32 %v1018_v33, %v200_v53 }
  0xfd   :  { %v273_v56 = vmax.f32 %v201_v54, 0.0 }
  0xff   :  { %v303_v57 = vpack.c.bf16 %v273_v56, %v272_v55 }
 0x101   :  { %842 = vmatmul.msk.bf16.gmra.mxu1 %vm351_vm1, %v303_v57 }
 0x102   :  { %v203_v58 = vpop.f32.mrf.mxu0 }
 0x103   :  { %v204_v59 = vadd.f32 %v1018_v33, %v203_v58 }
 0x105   :  { %v274_v62 = vmax.f32 %v204_v59, 0.0 }
 0x10a   :  { %v205_v60 = vpop.f32.mrf.mxu0 }
 0x10b   :  { %v206_v61 = vadd.f32 %v1018_v33, %v205_v60 }
 0x10d   :  { %v275_v63 = vmax.f32 %v206_v61, 0.0 }
 0x10e   :  { %v418_v0 = vpop.f32.mrf.mxu1 }
 0x10f   :  { %v304_v1 = vpack.c.bf16 %v275_v63, %v274_v62  ;;  %v419_v4 = vadd.f32 %v1126_v2, %v418_v0 }
 0x111   :  { %843 = vmatmul.msk.bf16.gmra.mxu1 %vm351_vm1, %v304_v1  ;;  %v513_v7 = vmax.f32 %v419_v4, 0.0 }
 0x112   :  { %v208_v3 = vpop.f32.mrf.mxu0 }
 0x113   :  { %v209_v8 = vadd.f32 %v1018_v33, %v208_v3 }
 0x115   :  { %v276_v13 = vmax.f32 %v209_v8, 0.0 }
 0x116   :  { %v420_v5 = vpop.f32.mrf.mxu1 }
 0x117   :  { %v421_v6 = vadd.f32 %v1126_v2, %v420_v5 }
 0x119   :  { %v514_v9 = vmax.f32 %v421_v6, 0.0 }
 0x11a   :  { %v210_v10 = vpop.f32.mrf.mxu0 }
 0x11b   :  { %v211_v11 = vadd.f32 %v1018_v33, %v210_v10  ;;  %v551_v12 = vpack.c.bf16 %v514_v9, %v513_v7  ;;  %v238_v10 = vpop.f32.mrf.mxu3 }
 0x11d   :  { %v277_v14 = vmax.f32 %v211_v11, 0.0  ;;  %862 = vmatmul.msk.bf16.vlgmr.msra.gmra.mxu2 %vm590_vm2, %v551_v12 }
 0x11e   :  { %v423_v15 = vpop.f32.mrf.mxu1 }
 0x11f   :  { %v305_v16 = vpack.c.bf16 %v277_v14, %v276_v13  ;;  %v424_v18 = vadd.f32 %v1126_v2, %v423_v15 }
 0x121   :  { %844 = vmatmul.msk.bf16.gmra.mxu1 %vm351_vm1, %v305_v16  ;;  %v515_v21 = vmax.f32 %v424_v18, 0.0 }
 0x122   :  { %v213_v17 = vpop.f32.mrf.mxu0 }
 0x123   :  { %v214_v22 = vadd.f32 %v1018_v33, %v213_v17  ;;  %v240_v16 = vpop.f32.mrf.mxu3 }
 0x125   :  { %v278_v27 = vmax.f32 %v214_v22, 0.0 }
 0x126   :  { %v425_v19 = vpop.f32.mrf.mxu1 }
 0x127   :  { %v426_v20 = vadd.f32 %v1126_v2, %v425_v19 }
 0x129   :  { %v516_v23 = vmax.f32 %v426_v20, 0.0 }
 0x12a   :  { %v215_v24 = vpop.f32.mrf.mxu0 }
 0x12b   :  { %v216_v25 = vadd.f32 %v1018_v33, %v215_v24  ;;  %v552_v26 = vpack.c.bf16 %v516_v23, %v515_v21 }
 0x12d   :  { %v279_v28 = vmax.f32 %v216_v25, 0.0  ;;  %863 = vmatmul.msk.bf16.gmra.mxu2 %vm590_vm2, %v552_v26 }
 0x12e   :  { %v428_v29 = vpop.f32.mrf.mxu1 }
 0x12f   :  { %v306_v30 = vpack.c.bf16 %v279_v28, %v278_v27  ;;  %v429_v32 = vadd.f32 %v1126_v2, %v428_v29  ;;  %v243_v27 = vpop.f32.mrf.mxu3 }
 0x131   :  { %845 = vmatmul.msk.bf16.gmra.mxu1 %vm351_vm1, %v306_v30  ;;  %v517_v36 = vmax.f32 %v429_v32, 0.0  ;;  %v239_v30 = vadd.f32 %v1018_v33, %v238_v10 }
 0x132   :  { %v218_v31 = vpop.f32.mrf.mxu0 }
 0x133   :  { %v219_v37 = vadd.f32 %v1018_v33, %v218_v31  ;;  %v241_v31 = vadd.f32 %v1018_v33, %v240_v16 }
 0x135   :  { %v280_v42 = vmax.f32 %v219_v37, 0.0  ;;  %v289_v37 = vmax.f32 %v241_v31, 0.0 }
 0x136   :  { %v430_v34 = vpop.f32.mrf.mxu1 }
 0x137   :  { %v431_v35 = vadd.f32 %v1126_v2, %v430_v34 }
 0x139   :  { %v518_v38 = vmax.f32 %v431_v35, 0.0 }
 0x13a   :  { %v220_v39 = vpop.f32.mrf.mxu0 }
 0x13b   :  { %v553_v40 = vpack.c.bf16 %v518_v38, %v517_v36  ;;  %v221_v41 = vadd.f32 %v1018_v33, %v220_v39  ;;  %v288_v36 = vmax.f32 %v239_v30, 0.0  ;;  %v245_v39 = vpop.f32.mrf.mxu3 }
 0x13d   :  { %v281_v43 = vmax.f32 %v221_v41, 0.0  ;;  %864 = vmatmul.msk.bf16.gmra.mxu2 %vm590_vm2, %v553_v40  ;;  %v311_v41 = vpack.c.bf16 %v289_v37, %v288_v36 }
 0x13e   :  { %v433_v44 = vpop.f32.mrf.mxu1 }
 0x13f   :  { %v307_v45 = vpack.c.bf16 %v281_v43, %v280_v42  ;;  %v434_v47 = vadd.f32 %v1126_v2, %v433_v44 }
 0x141   :  { %846 = vmatmul.msk.bf16.gmra.mxu1 %vm351_vm1, %v307_v45  ;;  %v519_v50 = vmax.f32 %v434_v47, 0.0  ;;  %v244_v45 = vadd.f32 %v1018_v33, %v243_v27 }
 0x142   :  { %v223_v46 = vpop.f32.mrf.mxu0 }
 0x143   :  { %v224_v51 = vadd.f32 %v1018_v33, %v223_v46  ;;  %v248_v44 = vpop.f32.mrf.mxu3  ;;  %v246_v46 = vadd.f32 %v1018_v33, %v245_v39 }
 0x145   :  { %v282_v56 = vmax.f32 %v224_v51, 0.0  ;;  %v291_v51 = vmax.f32 %v246_v46, 0.0 }
 0x146   :  { %v435_v48 = vpop.f32.mrf.mxu1 }
 0x147   :  { %v436_v49 = vadd.f32 %v1126_v2, %v435_v48 }
 0x149   :  { %v520_v52 = vmax.f32 %v436_v49, 0.0 }
 0x14a   :  { %v225_v53 = vpop.f32.mrf.mxu0 }
 0x14b   :  { %v554_v54 = vpack.c.bf16 %v520_v52, %v519_v50  ;;  %v226_v55 = vadd.f32 %v1018_v33, %v225_v53  ;;  %v290_v50 = vmax.f32 %v244_v45, 0.0 }
 0x14d   :  { %v283_v57 = vmax.f32 %v226_v55, 0.0  ;;  %865 = vmatmul.msk.bf16.gmra.mxu2 %vm590_vm2, %v554_v54  ;;  %v312_v54 = vpack.c.bf16 %v291_v51, %v290_v50  ;;  %v250_v55 = vpop.f32.mrf.mxu3 }
 0x14e   :  { %v438_v58 = vpop.f32.mrf.mxu1 }
 0x14f   :  { %v308_v59 = vpack.c.bf16 %v283_v57, %v282_v56  ;;  %v439_v61 = vadd.f32 %v1126_v2, %v438_v58  ;;  %v249_v58 = vadd.f32 %v1018_v33, %v248_v44 }
 0x151   :  { %847 = vmatmul.msk.bf16.gmra.mxu1 %vm351_vm1, %v308_v59  ;;  %v521_v0 = vmax.f32 %v439_v61, 0.0  ;;  %v251_v59 = vadd.f32 %v1018_v33, %v250_v55 }
 0x152   :  { %v228_v60 = vpop.f32.mrf.mxu0 }
 0x153   :  { %v229_v1 = vadd.f32 %v1018_v33, %v228_v60 }
 0x155   :  { %v284_v7 = vmax.f32 %v229_v1, 0.0  ;;  %v293_v1 = vmax.f32 %v251_v59, 0.0 }
 0x156   :  { %v440_v62 = vpop.f32.mrf.mxu1 }
 0x157   :  { %v441_v63 = vadd.f32 %v1126_v2, %v440_v62 }
 0x159   :  { %v522_v3 = vmax.f32 %v441_v63, 0.0  ;;  %v253_v63 = vpop.f32.mrf.mxu3 }
 0x15a   :  { %v230_v4 = vpop.f32.mrf.mxu0 }
 0x15b   :  { %v555_v5 = vpack.c.bf16 %v522_v3, %v521_v0  ;;  %v231_v6 = vadd.f32 %v1018_v33, %v230_v4  ;;  %v292_v0 = vmax.f32 %v249_v58, 0.0  ;;  %v1185_v4 = vld [vmem:[%s1416_s6] ss:$0 sm:$0xff] }
 0x15d   :  { %v285_v8 = vmax.f32 %v231_v6, 0.0  ;;  %866 = vmatmul.msk.bf16.gmra.mxu2 %vm590_vm2, %v555_v5  ;;  %v313_v6 = vpack.c.bf16 %v293_v1, %v292_v0 }
 0x15e   :  { %v443_v9 = vpop.f32.mrf.mxu1 }
 0x15f   :  { %v309_v11 = vpack.c.bf16 %v285_v8, %v284_v7  ;;  %v444_v13 = vadd.f32 %v1126_v2, %v443_v9 }
 0x161   :  { %848 = vmatmul.msk.bf16.gmra.mxu1 %vm351_vm1, %v309_v11  ;;  %v523_v17 = vmax.f32 %v444_v13, 0.0  ;;  %v255_v9 = vpop.f32.mrf.mxu3 }
 0x162   :  { %v233_v12 = vpop.f32.mrf.mxu0  ;;  %v256_v13 = vadd.f32 %v1018_v33, %v255_v9 }
 0x163   :  { %v234_v18 = vadd.f32 %v1018_v33, %v233_v12  ;;  %v254_v12 = vadd.f32 %v1018_v33, %v253_v63 }
 0x165   :  { %v286_v23 = vmax.f32 %v234_v18, 0.0 }
 0x166   :  { %v445_v14 = vpop.f32.mrf.mxu1 }
 0x167   :  { %v446_v15 = vadd.f32 %v1126_v2, %v445_v14 }
 0x169   :  { %v524_v19 = vmax.f32 %v446_v15, 0.0 }
 0x16a   :  { %v235_v20 = vpop.f32.mrf.mxu0 }
 0x16b   :  { %v556_v21 = vpack.c.bf16 %v524_v19, %v523_v17  ;;  %v236_v22 = vadd.f32 %v1018_v33, %v235_v20  ;;  %v294_v19 = vmax.f32 %v254_v12, 0.0  ;;  %v295_v20 = vmax.f32 %v256_v13, 0.0 }
 0x16d   :  { %v287_v24 = vmax.f32 %v236_v22, 0.0  ;;  %867 = vmatmul.msk.bf16.gmra.mxu2 %vm590_vm2, %v556_v21 }
 0x16e   :  { %v448_v25 = vpop.f32.mrf.mxu1 }
 0x16f   :  { %v310_v26 = vpack.c.bf16 %v287_v24, %v286_v23  ;;  %v449_v28 = vadd.f32 %v1126_v2, %v448_v25  ;;  %v314_v23 = vpack.c.bf16 %v295_v20, %v294_v19 }
 0x171   :  { %849 = vmatmul.msk.bf16.vlgmr.msrb.gmra.mxu3 %vm351_vm1, %v310_v26  ;;  %v525_v34 = vmax.f32 %v449_v28, 0.0 }
 0x176   :  { %v450_v29 = vpop.f32.mrf.mxu1 }
 0x177   :  { %v451_v32 = vadd.f32 %v1126_v2, %v450_v29 }
 0x179   :  { %v526_v35 = vmax.f32 %v451_v32, 0.0 }
 0x17b   :  { %v557_v38 = vpack.c.bf16 %v526_v35, %v525_v34 }
 0x17d   :  { %868 = vmatmul.msk.bf16.gmra.mxu2 %vm590_vm2, %v557_v38 }
 0x17e   :  { %v453_v40 = vpop.f32.mrf.mxu1 }
 0x17f   :  { %v454_v42 = vadd.f32 %v1126_v2, %v453_v40 }
 0x181   :  { %850 = vmatmul.msk.bf16.gmra.mxu3 %vm351_vm1, %v311_v41  ;;  %v527_v48 = vmax.f32 %v454_v42, 0.0 }
 0x186   :  { %v455_v43 = vpop.f32.mrf.mxu1 }
 0x187   :  { %v456_v47 = vadd.f32 %v1126_v2, %v455_v43 }
 0x189   :  { %v528_v49 = vmax.f32 %v456_v47, 0.0 }
 0x18b   :  { %v558_v52 = vpack.c.bf16 %v528_v49, %v527_v48 }
 0x18d   :  { %869 = vmatmul.msk.bf16.gmra.mxu2 %vm590_vm2, %v558_v52 }
 0x18e   :  { %v458_v53 = vpop.f32.mrf.mxu1 }
 0x18f   :  { %v459_v56 = vadd.f32 %v1126_v2, %v458_v53 }
 0x191   :  { %851 = vmatmul.msk.bf16.gmra.mxu3 %vm351_vm1, %v312_v54  ;;  %v529_v61 = vmax.f32 %v459_v56, 0.0 }
 0x196   :  { %v460_v57 = vpop.f32.mrf.mxu1 }
 0x197   :  { %v461_v60 = vadd.f32 %v1126_v2, %v460_v57 }
 0x199   :  { %v530_v62 = vmax.f32 %v461_v60, 0.0 }
 0x19b   :  { %v559_v3 = vpack.c.bf16 %v530_v62, %v529_v61 }
 0x19d   :  { %870 = vmatmul.msk.bf16.gmra.mxu2 %vm590_vm2, %v559_v3 }
 0x19e   :  { %v463_v5 = vpop.f32.mrf.mxu1 }
 0x19f   :  { %v464_v10 = vadd.f32 %v1126_v2, %v463_v5 }
 0x1a0   :  { %v657_v7 = vpop.f32.mrf.mxu2 }
 0x1a1   :  { %v658_v8 = vadd.f32 %v1185_v4, %v657_v7  ;;  %852 = vmatmul.msk.bf16.gmra.mxu3 %vm351_vm1, %v313_v6  ;;  %v531_v16 = vmax.f32 %v464_v10, 0.0 }
 0x1a3   :  { %753 = vst.msk [vmem:[%s1417_s7] sm:$0xff] %vm752_vm3, %v658_v8 }
 0x1a6   :  { %v465_v11 = vpop.f32.mrf.mxu1 }
 0x1a7   :  { %v466_v14 = vadd.f32 %v1126_v2, %v465_v11 }
 0x1a8   :  { %v659_v15 = vpop.f32.mrf.mxu2 }
 0x1a9   :  { %v532_v17 = vmax.f32 %v466_v14, 0.0  ;;  %v660_v18 = vadd.f32 %v1185_v4, %v659_v15 }
 0x1ab   :  { %v560_v21 = vpack.c.bf16 %v532_v17, %v531_v16  ;;  %754 = vst.msk [vmem:[%s1417_s7 + $0x8] sm:$0xff] %vm752_vm3, %v660_v18 }
 0x1ad   :  { %871 = vmatmul.msk.bf16.gmra.mxu2 %vm590_vm2, %v560_v21 }
 0x1ae   :  { %v468_v22 = vpop.f32.mrf.mxu1 }
 0x1af   :  { %v469_v25 = vadd.f32 %v1126_v2, %v468_v22 }
 0x1b0   :  { %v662_v33 = vpop.f32.mrf.mxu2 }
 0x1b1   :  { %v663_v24 = vadd.f32 %v1185_v4, %v662_v33  ;;  %853 = vmatmul.msk.bf16.gmra.mxu3 %vm351_vm1, %v314_v23  ;;  %v533_v29 = vmax.f32 %v469_v25, 0.0 }
 0x1b3   :  { %755 = vst.msk [vmem:[%s1417_s7 + $0x10] sm:$0xff] %vm752_vm3, %v663_v24 }
 0x1b6   :  { %v470_v26 = vpop.f32.mrf.mxu1 }
 0x1b7   :  { %v471_v27 = vadd.f32 %v1126_v2, %v470_v26 }
 0x1b8   :  { %v664_v28 = vpop.f32.mrf.mxu2 }
 0x1b9   :  { %v534_v30 = vmax.f32 %v471_v27, 0.0  ;;  %v665_v31 = vadd.f32 %v1185_v4, %v664_v28 }
 0x1bb   :  { %v561_v32 = vpack.c.bf16 %v534_v30, %v533_v29  ;;  %756 = vst.msk [vmem:[%s1417_s7 + $0x18] sm:$0xff] %vm752_vm3, %v665_v31 }
 0x1bd   :  { %872 = vmatmul.msk.bf16.gmra.mxu2 %vm590_vm2, %v561_v32 }
 0x1be   :  { %v473_v34 = vpop.f32.mrf.mxu1 }
 0x1bf   :  { %v474_v37 = vadd.f32 %v1126_v2, %v473_v34 }
 0x1c0   :  { %v667_v35 = vpop.f32.mrf.mxu2 }
 0x1c1   :  { %v668_v36 = vadd.f32 %v1185_v4, %v667_v35  ;;  %v535_v41 = vmax.f32 %v474_v37, 0.0 }
 0x1c3   :  { %757 = vst.msk [vmem:[%s1417_s7 + $0x20] sm:$0xff] %vm752_vm3, %v668_v36 }
 0x1c6   :  { %v475_v38 = vpop.f32.mrf.mxu1 }
 0x1c7   :  { %v476_v39 = vadd.f32 %v1126_v2, %v475_v38 }
 0x1c8   :  { %v669_v40 = vpop.f32.mrf.mxu2 }
 0x1c9   :  { %v536_v42 = vmax.f32 %v476_v39, 0.0  ;;  %v670_v43 = vadd.f32 %v1185_v4, %v669_v40 }
 0x1cb   :  { %v562_v44 = vpack.c.bf16 %v536_v42, %v535_v41  ;;  %758 = vst.msk [vmem:[%s1417_s7 + $0x28] sm:$0xff] %vm752_vm3, %v670_v43 }
 0x1cd   :  { %873 = vmatmul.msk.bf16.gmra.mxu2 %vm590_vm2, %v562_v44 }
 0x1ce   :  { %v478_v45 = vpop.f32.mrf.mxu1 }
 0x1cf   :  { %v479_v48 = vadd.f32 %v1126_v2, %v478_v45 }
 0x1d0   :  { %v672_v46 = vpop.f32.mrf.mxu2 }
 0x1d1   :  { %v673_v47 = vadd.f32 %v1185_v4, %v672_v46  ;;  %v537_v52 = vmax.f32 %v479_v48, 0.0 }
 0x1d3   :  { %759 = vst.msk [vmem:[%s1417_s7 + $0x30] sm:$0xff] %vm752_vm3, %v673_v47 }
 0x1d6   :  { %v480_v49 = vpop.f32.mrf.mxu1 }
 0x1d7   :  { %v481_v50 = vadd.f32 %v1126_v2, %v480_v49 }
 0x1d8   :  { %v674_v51 = vpop.f32.mrf.mxu2 }
 0x1d9   :  { %v538_v53 = vmax.f32 %v481_v50, 0.0  ;;  %v675_v54 = vadd.f32 %v1185_v4, %v674_v51 }
 0x1db   :  { %v563_v55 = vpack.c.bf16 %v538_v53, %v537_v52  ;;  %760 = vst.msk [vmem:[%s1417_s7 + $0x38] sm:$0xff] %vm752_vm3, %v675_v54 }
 0x1dd   :  { %874 = vmatmul.msk.bf16.gmra.mxu2 %vm590_vm2, %v563_v55 }
 0x1de   :  { %v483_v56 = vpop.f32.mrf.mxu1 }
 0x1df   :  { %v484_v59 = vadd.f32 %v1126_v2, %v483_v56 }
 0x1e0   :  { %v677_v57 = vpop.f32.mrf.mxu2 }
 0x1e1   :  { %v678_v58 = vadd.f32 %v1185_v4, %v677_v57  ;;  %v539_v63 = vmax.f32 %v484_v59, 0.0 }
 0x1e3   :  { %761 = vst.msk [vmem:[%s1417_s7 + $0x40] sm:$0xff] %vm752_vm3, %v678_v58 }
 0x1e6   :  { %v485_v60 = vpop.f32.mrf.mxu1 }
 0x1e7   :  { %v486_v61 = vadd.f32 %v1126_v2, %v485_v60 }
 0x1e8   :  { %v679_v62 = vpop.f32.mrf.mxu2 }
 0x1e9   :  { %v540_v0 = vmax.f32 %v486_v61, 0.0  ;;  %v680_v1 = vadd.f32 %v1185_v4, %v679_v62 }
 0x1eb   :  { %v564_v3 = vpack.c.bf16 %v540_v0, %v539_v63  ;;  %762 = vst.msk [vmem:[%s1417_s7 + $0x48] sm:$0xff] %vm752_vm3, %v680_v1 }
 0x1ed   :  { %875 = vmatmul.msk.bf16.gmra.mxu2 %vm590_vm2, %v564_v3 }
 0x1f0   :  { %v682_v5 = vpop.f32.mrf.mxu2 }
 0x1f1   :  { %v683_v6 = vadd.f32 %v1185_v4, %v682_v5 }
 0x1f3   :  { %763 = vst.msk [vmem:[%s1417_s7 + $0x50] sm:$0xff] %vm752_vm3, %v683_v6 }
 0x1f4   :  { %v488_v7 = vpop.f32.mrf.mxu3 }
 0x1f5   :  { %v489_v10 = vadd.f32 %v1126_v2, %v488_v7 }
 0x1f7   :  { %v541_v13 = vmax.f32 %v489_v10, 0.0 }
 0x1f8   :  { %v684_v8 = vpop.f32.mrf.mxu2 }
 0x1f9   :  { %v685_v9 = vadd.f32 %v1185_v4, %v684_v8 }
 0x1fb   :  { %764 = vst.msk [vmem:[%s1417_s7 + $0x58] sm:$0xff] %vm752_vm3, %v685_v9 }
 0x1fc   :  { %v490_v11 = vpop.f32.mrf.mxu3 }
 0x1fd   :  { %v491_v12 = vadd.f32 %v1126_v2, %v490_v11 }
 0x1ff   :  { %v542_v14 = vmax.f32 %v491_v12, 0.0 }
 0x200   :  { %v687_v15 = vpop.f32.mrf.mxu2 }
 0x201   :  { %v565_v16 = vpack.c.bf16 %v542_v14, %v541_v13  ;;  %v688_v17 = vadd.f32 %v1185_v4, %v687_v15 }
 0x203   :  { %765 = vst.msk [vmem:[%s1417_s7 + $0x60] sm:$0xff] %vm752_vm3, %v688_v17  ;;  %876 = vmatmul.msk.bf16.gmra.mxu2 %vm590_vm2, %v565_v16 }
 0x204   :  { %v493_v18 = vpop.f32.mrf.mxu3 }
 0x205   :  { %v494_v21 = vadd.f32 %v1126_v2, %v493_v18 }
 0x207   :  { %v543_v33 = vmax.f32 %v494_v21, 0.0 }
 0x208   :  { %v689_v19 = vpop.f32.mrf.mxu2 }
 0x209   :  { %v690_v20 = vadd.f32 %v1185_v4, %v689_v19 }
 0x20b   :  { %766 = vst.msk [vmem:[%s1417_s7 + $0x68] sm:$0xff] %vm752_vm3, %v690_v20 }
 0x20c   :  { %v495_v22 = vpop.f32.mrf.mxu3 }
 0x20d   :  { %v496_v23 = vadd.f32 %v1126_v2, %v495_v22 }
 0x20f   :  { %v544_v24 = vmax.f32 %v496_v23, 0.0 }
 0x210   :  { %v692_v25 = vpop.f32.mrf.mxu2 }
 0x211   :  { %v566_v26 = vpack.c.bf16 %v544_v24, %v543_v33  ;;  %v693_v27 = vadd.f32 %v1185_v4, %v692_v25 }
 0x213   :  { %767 = vst.msk [vmem:[%s1417_s7 + $0x70] sm:$0xff] %vm752_vm3, %v693_v27  ;;  %877 = vmatmul.msk.bf16.vlgmr.msra.gmra.mxu3 %vm590_vm2, %v566_v26 }
 0x214   :  { %v498_v28 = vpop.f32.mrf.mxu3 }
 0x215   :  { %v499_v31 = vadd.f32 %v1126_v2, %v498_v28 }
 0x217   :  { %v545_v35 = vmax.f32 %v499_v31, 0.0 }
 0x218   :  { %v694_v29 = vpop.f32.mrf.mxu2 }
 0x219   :  { %v695_v30 = vadd.f32 %v1185_v4, %v694_v29 }
 0x21b   :  { %768 = vst.msk [vmem:[%s1417_s7 + $0x78] sm:$0xff] %vm752_vm3, %v695_v30 }
 0x21c   :  { %v500_v32 = vpop.f32.mrf.mxu3 }
 0x21d   :  { %v501_v34 = vadd.f32 %v1126_v2, %v500_v32 }
 0x21f   :  { %v546_v36 = vmax.f32 %v501_v34, 0.0 }
 0x220   :  { %v697_v37 = vpop.f32.mrf.mxu2 }
 0x221   :  { %v567_v38 = vpack.c.bf16 %v546_v36, %v545_v35  ;;  %v698_v39 = vadd.f32 %v1185_v4, %v697_v37 }
 0x223   :  { %769 = vst.msk [vmem:[%s1417_s7 + $0x80] sm:$0xff] %vm752_vm3, %v698_v39  ;;  %878 = vmatmul.msk.bf16.gmra.mxu3 %vm590_vm2, %v567_v38 }
 0x224   :  { %v503_v40 = vpop.f32.mrf.mxu3 }
 0x225   :  { %v504_v43 = vadd.f32 %v1126_v2, %v503_v40 }
 0x227   :  { %v547_v46 = vmax.f32 %v504_v43, 0.0 }
 0x228   :  { %v699_v41 = vpop.f32.mrf.mxu2 }
 0x229   :  { %v700_v42 = vadd.f32 %v1185_v4, %v699_v41 }
 0x22b   :  { %770 = vst.msk [vmem:[%s1417_s7 + $0x88] sm:$0xff] %vm752_vm3, %v700_v42 }
 0x22c   :  { %v505_v44 = vpop.f32.mrf.mxu3 }
 0x22d   :  { %v506_v45 = vadd.f32 %v1126_v2, %v505_v44 }
 0x22f   :  { %v548_v47 = vmax.f32 %v506_v45, 0.0 }
 0x230   :  { %v702_v48 = vpop.f32.mrf.mxu2 }
 0x231   :  { %v568_v49 = vpack.c.bf16 %v548_v47, %v547_v46  ;;  %v703_v50 = vadd.f32 %v1185_v4, %v702_v48 }
 0x233   :  { %771 = vst.msk [vmem:[%s1417_s7 + $0x90] sm:$0xff] %vm752_vm3, %v703_v50  ;;  %879 = vmatmul.msk.bf16.gmra.mxu3 %vm590_vm2, %v568_v49 }
 0x234   :  { %v508_v51 = vpop.f32.mrf.mxu3 }
 0x235   :  { %v509_v54 = vadd.f32 %v1126_v2, %v508_v51 }
 0x237   :  { %v549_v57 = vmax.f32 %v509_v54, 0.0 }
 0x238   :  { %v704_v52 = vpop.f32.mrf.mxu2 }
 0x239   :  { %v705_v53 = vadd.f32 %v1185_v4, %v704_v52 }
 0x23b   :  { %772 = vst.msk [vmem:[%s1417_s7 + $0x98] sm:$0xff] %vm752_vm3, %v705_v53 }
 0x23c   :  { %v510_v55 = vpop.f32.mrf.mxu3 }
 0x23d   :  { %v511_v56 = vadd.f32 %v1126_v2, %v510_v55 }
 0x23f   :  { %v550_v58 = vmax.f32 %v511_v56, 0.0 }
 0x240   :  { %v707_v59 = vpop.f32.mrf.mxu2 }
 0x241   :  { %v569_v60 = vpack.c.bf16 %v550_v58, %v549_v57  ;;  %v708_v61 = vadd.f32 %v1185_v4, %v707_v59 }
 0x243   :  { %773 = vst.msk [vmem:[%s1417_s7 + $0xa0] sm:$0xff] %vm752_vm3, %v708_v61  ;;  %880 = vmatmul.msk.bf16.gmra.mxu3 %vm590_vm2, %v569_v60 }
 0x248   :  { %v709_v62 = vpop.f32.mrf.mxu2 }
 0x249   :  { %v710_v63 = vadd.f32 %v1185_v4, %v709_v62 }
 0x24b   :  { %774 = vst.msk [vmem:[%s1417_s7 + $0xa8] sm:$0xff] %vm752_vm3, %v710_v63 }
 0x250   :  { %v712_v2 = vpop.f32.mrf.mxu2 }
 0x251   :  { %v713_v0 = vadd.f32 %v1185_v4, %v712_v2 }
 0x253   :  { %775 = vst.msk [vmem:[%s1417_s7 + $0xb0] sm:$0xff] %vm752_vm3, %v713_v0 }
 0x258   :  { %v714_v1 = vpop.f32.mrf.mxu2 }
 0x259   :  { %v715_v3 = vadd.f32 %v1185_v4, %v714_v1 }
 0x25b   :  { %776 = vst.msk [vmem:[%s1417_s7 + $0xb8] sm:$0xff] %vm752_vm3, %v715_v3 }
 0x260   :  { %v717_v5 = vpop.f32.mrf.mxu2 }
 0x261   :  { %v718_v6 = vadd.f32 %v1185_v4, %v717_v5 }
 0x263   :  { %777 = vst.msk [vmem:[%s1417_s7 + $0xc0] sm:$0xff] %vm752_vm3, %v718_v6 }
 0x268   :  { %v719_v7 = vpop.f32.mrf.mxu2 }
 0x269   :  { %v720_v8 = vadd.f32 %v1185_v4, %v719_v7 }
 0x26b   :  { %778 = vst.msk [vmem:[%s1417_s7 + $0xc8] sm:$0xff] %vm752_vm3, %v720_v8 }
 0x270   :  { %v722_v9 = vpop.f32.mrf.mxu2 }
 0x271   :  { %v723_v10 = vadd.f32 %v1185_v4, %v722_v9 }
 0x273   :  { %779 = vst.msk [vmem:[%s1417_s7 + $0xd0] sm:$0xff] %vm752_vm3, %v723_v10 }
 0x278   :  { %v724_v11 = vpop.f32.mrf.mxu2 }
 0x279   :  { %v725_v12 = vadd.f32 %v1185_v4, %v724_v11 }
 0x27b   :  { %780 = vst.msk [vmem:[%s1417_s7 + $0xd8] sm:$0xff] %vm752_vm3, %v725_v12 }
 0x286   :  { %v727_v13 = vpop.f32.mrf.mxu2 }
 0x287   :  { %v728_v14 = vadd.f32 %v1185_v4, %v727_v13 }
 0x289   :  { %781 = vst.msk [vmem:[%s1417_s7 + $0xe0] sm:$0xff] %vm752_vm3, %v728_v14 }
 0x28e   :  { %v729_v15 = vpop.f32.mrf.mxu2 }
 0x28f   :  { %v730_v16 = vadd.f32 %v1185_v4, %v729_v15 }
 0x291   :  { %782 = vst.msk [vmem:[%s1417_s7 + $0xe8] sm:$0xff] %vm752_vm3, %v730_v16 }
 0x296   :  { %v732_v17 = vpop.f32.mrf.mxu3 }
 0x297   :  { %v733_v18 = vadd.f32 %v1185_v4, %v732_v17 }
 0x299   :  { %783 = vst.msk [vmem:[%s1417_s7 + $0xf0] sm:$0xff] %vm752_vm3, %v733_v18 }
 0x29e   :  { %v734_v19 = vpop.f32.mrf.mxu3 }
 0x29f   :  { %v735_v20 = vadd.f32 %v1185_v4, %v734_v19 }
 0x2a1   :  { %784 = vst.msk [vmem:[%s1417_s7 + $0xf8] sm:$0xff] %vm752_vm3, %v735_v20 }
 0x2a6   :  { %v737_v21 = vpop.f32.mrf.mxu3 }
 0x2a7   :  { %v738_v22 = vadd.f32 %v1185_v4, %v737_v21 }
 0x2a9   :  { %785 = vst.msk [vmem:[%s1417_s7 + $0x100] sm:$0xff] %vm752_vm3, %v738_v22 }
 0x2ae   :  { %v739_v23 = vpop.f32.mrf.mxu3 }
 0x2af   :  { %v740_v33 = vadd.f32 %v1185_v4, %v739_v23 }
 0x2b1   :  { %786 = vst.msk [vmem:[%s1417_s7 + $0x108] sm:$0xff] %vm752_vm3, %v740_v33 }
 0x2b6   :  { %v742_v24 = vpop.f32.mrf.mxu3 }
 0x2b7   :  { %v743_v25 = vadd.f32 %v1185_v4, %v742_v24 }
 0x2b9   :  { %787 = vst.msk [vmem:[%s1417_s7 + $0x110] sm:$0xff] %vm752_vm3, %v743_v25 }
 0x2be   :  { %v744_v26 = vpop.f32.mrf.mxu3 }
 0x2bf   :  { %v745_v27 = vadd.f32 %v1185_v4, %v744_v26 }
 0x2c1   :  { %788 = vst.msk [vmem:[%s1417_s7 + $0x118] sm:$0xff] %vm752_vm3, %v745_v27 }
 0x2c6   :  { %v747_v28 = vpop.f32.mrf.mxu3 }
 0x2c7   :  { %v748_v29 = vadd.f32 %v1185_v4, %v747_v28 }
 0x2c9   :  { %789 = vst.msk [vmem:[%s1417_s7 + $0x120] sm:$0xff] %vm752_vm3, %v748_v29 }
 0x2ce   :  { %v749_v30 = vpop.f32.mrf.mxu3 }
 0x2cf   :  { %v750_v31 = vadd.f32 %v1185_v4, %v749_v30 }
 0x2d1   :  { %791 = vst.msk [vmem:[%s1417_s7 + $0x128] sm:$0xf] %vm790_vm4, %v750_v31 }

</bundles_post_ra>
